<compile_context>
chip_gen: v7x
topology: tpu7x:2x2x1
jax: 0.10.0
libtpu: 0.0.40
codegen_flags: <defaults>
</compile_context>

<pallas_src>
import functools

import jax
import jax.numpy as jnp
from jax.experimental import pallas as pl
from jax.experimental.pallas import tpu as pltpu


_ROW_ALIGN = 8  # sublane-aligned placement of valid rows inside the halo scratch


def _fused_block_kernel(x_ref, t1_ref, b1_ref, t2_ref, b2_ref, o_ref,
                        xbuf, mbuf, *, H, W, Cout):
    """One batch element per grid step.

    x_ref : (1, H, W*Cin)          input rows, (w, ci) flattened onto lanes
    t1_ref: (3, W*Cin,  W*Cout)    conv1 block-Toeplitz weights (BN1 scale folded in)
    b1_ref: (1, W*Cout)            conv1 folded bias, tiled per output column
    t2_ref: (3, W*Cout, W*Cout)    conv2 block-Toeplitz weights (BN2 scale folded in)
    b2_ref: (1, W*Cout)            conv2 folded bias, tiled per output column
    o_ref : (1, H, W*Cout)         lane-dense output
    xbuf  : VMEM (H + 2*_ROW_ALIGN, W*Cin)   zero row-halo staging for the input
    mbuf  : VMEM (H + 2*_ROW_ALIGN, W*Cout)  zero row-halo staging for the intermediate
    """
    RP = _ROW_ALIGN
    WCo = W * Cout

    # Zero the halo scratches, then place valid rows at a sublane-aligned offset.
    # Rows RP-1 and RP+H stay zero and provide the 'same'-padding halo.
    xbuf[...] = jnp.zeros_like(xbuf)
    mbuf[...] = jnp.zeros_like(mbuf)
    xbuf[RP:RP + H, :] = x_ref[0]

    # ---- conv1 (+ folded BN1) + ReLU: 3 MXU matmuls, K = W*Cin, N = W*Cout ----
    acc = jnp.zeros((H, WCo), jnp.float32)
    for ky in range(3):
        lhs = xbuf[RP - 1 + ky:RP - 1 + ky + H, :]          # input rows h + ky - 1
        acc = acc + jnp.dot(lhs, t1_ref[ky],
                            preferred_element_type=jnp.float32)
    y1 = jnp.maximum(acc + b1_ref[...], 0.0)
    mbuf[RP:RP + H, :] = y1                                 # intermediate stays in VMEM

    # ---- conv2 (+ folded BN2) + ReLU: 3 MXU matmuls, K = W*Cout, N = W*Cout ----
    acc = jnp.zeros((H, WCo), jnp.float32)
    for ky in range(3):
        lhs = mbuf[RP - 1 + ky:RP - 1 + ky + H, :]
        acc = acc + jnp.dot(lhs, t2_ref[ky],
                            preferred_element_type=jnp.float32)
    y2 = jnp.maximum(acc + b2_ref[...], 0.0)

    # Dropout2d(p=0.1) is identity in eval mode.
    o_ref[0] = y2.astype(o_ref.dtype)                       # lane-dense (H, W*Cout) store


def _toeplitz_weights(w_hwio, W):
    """(3, 3, Cin, Cout) conv weights -> (3, W*Cin, W*Cout) block-Toeplitz matrices.

    T[ky, wv*Cin + ci, w*Cout + co] = w[ky, wv - w + 1, ci, co] if (wv - w + 1) in {0,1,2}
                                      else 0
    so that out[h, w, co] = sum_ky (x_row[h + ky - 1] @ T[ky])[w*Cout + co] reproduces a
    3x3 'same' convolution (zero-padding columns drop out of the contraction).
    """
    _, _, Cin, Cout = w_hwio.shape
    wv = jnp.arange(W)[:, None]           # source column
    wo = jnp.arange(W)[None, :]           # output column
    kx = wv - wo + 1                      # (W, W)
    valid = (kx >= 0) & (kx < 3)
    t = w_hwio[:, jnp.clip(kx, 0, 2), :, :]                    # (3, wv, w, ci, co)
    t = jnp.where(valid[None, :, :, None, None], t, 0.0)
    t = jnp.transpose(t, (0, 1, 3, 2, 4))                      # (3, wv, ci, w, co)
    return t.reshape(3, W * Cin, W * Cout).astype(jnp.float32)


def fold_bn(conv_bias, gamma, beta, running_mean, running_var, eps=1e-5):
    """Fold conv bias + BatchNorm (inference) into per-channel scale/bias."""
    scale = gamma / jnp.sqrt(running_var + eps)
    bias = (conv_bias - running_mean) * scale + beta
    return scale, bias


def fused_conv_block(x_flat, t1, b1f, t2, b2f, *, H, W, Cin, Cout):
    """x_flat: (N, H, W*Cin) -> (N, H, W*Cout); fused conv+BN+ReLU x2."""
    N = x_flat.shape[0]
    RP = _ROW_ALIGN
    kernel = functools.partial(_fused_block_kernel, H=H, W=W, Cout=Cout)
    return pl.pallas_call(
        kernel,
        out_shape=jax.ShapeDtypeStruct((N, H, W * Cout), jnp.float32),
        grid_spec=pltpu.PrefetchScalarGridSpec(
            num_scalar_prefetch=0,
            grid=(N,),
            in_specs=[
                pl.BlockSpec((1, H, W * Cin), lambda b: (b, 0, 0)),
                pl.BlockSpec((3, W * Cin, W * Cout), lambda b: (0, 0, 0)),
                pl.BlockSpec((1, W * Cout), lambda b: (0, 0)),
                pl.BlockSpec((3, W * Cout, W * Cout), lambda b: (0, 0, 0)),
                pl.BlockSpec((1, W * Cout), lambda b: (0, 0)),
            ],
            out_specs=pl.BlockSpec((1, H, W * Cout), lambda b: (b, 0, 0)),
            scratch_shapes=[
                pltpu.VMEM((H + 2 * RP, W * Cin), jnp.float32),
                pltpu.VMEM((H + 2 * RP, W * Cout), jnp.float32),
            ],
        ),
        compiler_params=pltpu.CompilerParams(
            dimension_semantics=("parallel",)),
    )(x_flat, t1, b1f, t2, b2f)


def unet_conv_block_forward(x_nchw, params):
    """Full unet_Conv_Block forward. x_nchw: (N, Cin, H, W) -> (N, Cout, H, W)."""
    N, Cin, H, W = x_nchw.shape
    Cout = params["w1"].shape[-1]

    # NCHW -> NHWC -> (N, H, W*Cin): (w, ci) flattened onto the lane axis.
    x = jnp.transpose(x_nchw, (0, 2, 3, 1)).reshape(N, H, W * Cin)

    s1, b1 = fold_bn(params["b1"], params["g1"], params["beta1"],
                     params["m1"], params["v1"])
    s2, b2 = fold_bn(params["b2"], params["g2"], params["beta2"],
                     params["m2"], params["v2"])

    # Fold the BN scale into the conv weights; build block-Toeplitz matmul weights
    # (done once per call here; in a real model this is a one-time load transform).
    t1 = _toeplitz_weights(params["w1"] * s1, W)     # (3, W*Cin,  W*Cout)
    t2 = _toeplitz_weights(params["w2"] * s2, W)     # (3, W*Cout, W*Cout)
    b1f = jnp.tile(b1, W).reshape(1, W * Cout).astype(jnp.float32)
    b2f = jnp.tile(b2, W).reshape(1, W * Cout).astype(jnp.float32)

    out = fused_conv_block(x, t1, b1f, t2, b2f, H=H, W=W, Cin=Cin, Cout=Cout)
    out = out.reshape(N, H, W, Cout)
    return jnp.transpose(out, (0, 3, 1, 2))          # NHWC -> NCHW


def init_params(key, in_channels, out_channels):
    """Deterministic synthetic init mirroring the PyTorch module's parameter shapes."""
    k1, k2, k3, k4 = jax.random.split(key, 4)
    # PyTorch conv weights are (Cout, Cin, 3, 3); we store HWIO = (3, 3, Cin, Cout).
    w1_oihw = jax.random.normal(k1, (out_channels, in_channels, 3, 3), jnp.float32) * 0.1
    w2_oihw = jax.random.normal(k2, (out_channels, out_channels, 3, 3), jnp.float32) * 0.1
    return {
        "w1": jnp.transpose(w1_oihw, (2, 3, 1, 0)),
        "b1": jax.random.normal(k3, (out_channels,), jnp.float32) * 0.1,
        "g1": jnp.ones((out_channels,), jnp.float32),
        "beta1": jnp.zeros((out_channels,), jnp.float32),
        "m1": jnp.zeros((out_channels,), jnp.float32),
        "v1": jnp.ones((out_channels,), jnp.float32),
        "w2": jnp.transpose(w2_oihw, (2, 3, 1, 0)),
        "b2": jax.random.normal(k4, (out_channels,), jnp.float32) * 0.1,
        "g2": jnp.ones((out_channels,), jnp.float32),
        "beta2": jnp.zeros((out_channels,), jnp.float32),
        "m2": jnp.zeros((out_channels,), jnp.float32),
        "v2": jnp.ones((out_channels,), jnp.float32),
    }


if __name__ == "__main__":
    key = jax.random.PRNGKey(0)
    kx, kp = jax.random.split(key)

    N, Cin, Cout, H, W = 2, 4, 8, 16, 16
    x = jax.random.normal(kx, (N, Cin, H, W), jnp.float32)
    params = init_params(kp, Cin, Cout)

    out = unet_conv_block_forward(x, params)
    out = jax.block_until_ready(out)

    assert out.shape == (N, Cout, H, W), out.shape

    # Cross-check against a pure-JAX reference (lax conv + folded BN + ReLU).
    def ref(x_nchw):
        y = x_nchw
        for (w, b, g, bt, m, v) in [
            (params["w1"], params["b1"], params["g1"], params["beta1"], params["m1"], params["v1"]),
            (params["w2"], params["b2"], params["g2"], params["beta2"], params["m2"], params["v2"]),
        ]:
            w_oihw = jnp.transpose(w, (3, 2, 0, 1))
            y = jax.lax.conv_general_dilated(y, w_oihw, (1, 1), ((1, 1), (1, 1)),
                                             dimension_numbers=("NCHW", "OIHW", "NCHW"))
            s = g / jnp.sqrt(v + 1e-5)
            bb = (b - m) * s + bt
            y = y * s[None, :, None, None] + bb[None, :, None, None]
            y = jnp.maximum(y, 0.0)
        return y

    ref_out = ref(x)
    assert jnp.allclose(out, ref_out, atol=1e-4, rtol=1e-4), float(jnp.max(jnp.abs(out - ref_out)))

    print("KERNEL_OK")
</pallas_src>

<mosaic_0001>
module attributes {stable_mosaic.version = 11 : i64} {
  func.func @_fused_block_kernel(%arg0: i32, %arg1: memref<1x16x64xf32, #tpu.memory_space<vmem>>, %arg2: memref<3x64x128xf32, #tpu.memory_space<vmem>>, %arg3: memref<1x128xf32, #tpu.memory_space<vmem>>, %arg4: memref<3x128x128xf32, #tpu.memory_space<vmem>>, %arg5: memref<1x128xf32, #tpu.memory_space<vmem>>, %arg6: memref<1x16x128xf32, #tpu.memory_space<vmem>>, %arg7: memref<32x64xf32, #tpu.memory_space<vmem>>, %arg8: memref<32x128xf32, #tpu.memory_space<vmem>>) attributes {dimension_semantics = [#tpu.dimension_semantics<parallel>], iteration_bounds = array<i64: 2>, scalar_prefetch = 0 : i64, scratch_operands = 2 : i64, tpu.core_type = #tpu.core_type<tc>, window_params = [{transform_indices = @transform_0, window_bounds = array<i64: 1, 16, 64>}, {pipeline_mode = #tpu.pipeline_mode<synchronous>, transform_indices = @transform_1, window_bounds = array<i64: 3, 64, 128>}, {pipeline_mode = #tpu.pipeline_mode<synchronous>, transform_indices = @transform_2, window_bounds = array<i64: 1, 128>}, {pipeline_mode = #tpu.pipeline_mode<synchronous>, transform_indices = @transform_3, window_bounds = array<i64: 3, 128, 128>}, {pipeline_mode = #tpu.pipeline_mode<synchronous>, transform_indices = @transform_4, window_bounds = array<i64: 1, 128>}, {transform_indices = @transform_5, window_bounds = array<i64: 1, 16, 128>}]} {
    %cst = arith.constant 0.000000e+00 : f32
    %0 = vector.broadcast %cst : f32 to vector<32x64xf32>
    %c0 = arith.constant 0 : index
    %c0_0 = arith.constant 0 : index
    %1 = vector.load %arg7[%c0, %c0_0] : memref<32x64xf32, #tpu.memory_space<vmem>>, vector<32x64xf32>
    tpu.vector_store %arg7[%c0, %c0_0], %0 {strides = array<i32>} : memref<32x64xf32, #tpu.memory_space<vmem>>, vector<32x64xf32>,
    %cst_1 = arith.constant 0.000000e+00 : f32
    %2 = vector.broadcast %cst_1 : f32 to vector<32x128xf32>
    %c0_2 = arith.constant 0 : index
    %c0_3 = arith.constant 0 : index
    %3 = vector.load %arg8[%c0_2, %c0_3] : memref<32x128xf32, #tpu.memory_space<vmem>>, vector<32x128xf32>
    tpu.vector_store %arg8[%c0_2, %c0_3], %2 {strides = array<i32>} : memref<32x128xf32, #tpu.memory_space<vmem>>, vector<32x128xf32>,
    %c0_4 = arith.constant 0 : index
    %c0_5 = arith.constant 0 : index
    %c0_6 = arith.constant 0 : index
    %4 = vector.load %arg1[%c0_4, %c0_5, %c0_6] : memref<1x16x64xf32, #tpu.memory_space<vmem>>, vector<1x16x64xf32>
    %5 = vector.shape_cast %4 : vector<1x16x64xf32> to vector<16x64xf32>
    %c8 = arith.constant 8 : index
    %c0_7 = arith.constant 0 : index
    %6 = vector.load %arg7[%c8, %c0_7] : memref<32x64xf32, #tpu.memory_space<vmem>>, vector<16x64xf32>
    tpu.vector_store %arg7[%c8, %c0_7], %5 {strides = array<i32>} : memref<32x64xf32, #tpu.memory_space<vmem>>, vector<16x64xf32>,
    %cst_8 = arith.constant 0.000000e+00 : f32
    %7 = vector.broadcast %cst_8 : f32 to vector<16x128xf32>
    %c7 = arith.constant 7 : index
    %c0_9 = arith.constant 0 : index
    %8 = vector.load %arg7[%c7, %c0_9] : memref<32x64xf32, #tpu.memory_space<vmem>>, vector<16x64xf32>
    %c0_10 = arith.constant 0 : index
    %c0_11 = arith.constant 0 : index
    %c0_12 = arith.constant 0 : index
    %9 = vector.load %arg2[%c0_10, %c0_11, %c0_12] : memref<3x64x128xf32, #tpu.memory_space<vmem>>, vector<1x64x128xf32>
    %10 = vector.shape_cast %9 : vector<1x64x128xf32> to vector<64x128xf32>
    %cst_13 = arith.constant dense<0.000000e+00> : vector<16x128xf32>
    %11 = tpu.matmul %8, %10, %cst_13 {dimension_numbers = #tpu.dot_dimension_numbers<[1], [0], [0], [1], [0, 0, 1, 1], [], []>} : vector<16x64xf32>, vector<64x128xf32>, vector<16x128xf32> -> vector<16x128xf32>
    %12 = arith.addf %7, %11 : vector<16x128xf32>
    %c8_14 = arith.constant 8 : index
    %c0_15 = arith.constant 0 : index
    %13 = vector.load %arg7[%c8_14, %c0_15] : memref<32x64xf32, #tpu.memory_space<vmem>>, vector<16x64xf32>
    %c1 = arith.constant 1 : index
    %c0_16 = arith.constant 0 : index
    %c0_17 = arith.constant 0 : index
    %14 = vector.load %arg2[%c1, %c0_16, %c0_17] : memref<3x64x128xf32, #tpu.memory_space<vmem>>, vector<1x64x128xf32>
    %15 = vector.shape_cast %14 : vector<1x64x128xf32> to vector<64x128xf32>
    %cst_18 = arith.constant dense<0.000000e+00> : vector<16x128xf32>
    %16 = tpu.matmul %13, %15, %cst_18 {dimension_numbers = #tpu.dot_dimension_numbers<[1], [0], [0], [1], [0, 0, 1, 1], [], []>} : vector<16x64xf32>, vector<64x128xf32>, vector<16x128xf32> -> vector<16x128xf32>
    %17 = arith.addf %12, %16 : vector<16x128xf32>
    %c9 = arith.constant 9 : index
    %c0_19 = arith.constant 0 : index
    %18 = vector.load %arg7[%c9, %c0_19] : memref<32x64xf32, #tpu.memory_space<vmem>>, vector<16x64xf32>
    %c2 = arith.constant 2 : index
    %c0_20 = arith.constant 0 : index
    %c0_21 = arith.constant 0 : index
    %19 = vector.load %arg2[%c2, %c0_20, %c0_21] : memref<3x64x128xf32, #tpu.memory_space<vmem>>, vector<1x64x128xf32>
    %20 = vector.shape_cast %19 : vector<1x64x128xf32> to vector<64x128xf32>
    %cst_22 = arith.constant dense<0.000000e+00> : vector<16x128xf32>
    %21 = tpu.matmul %18, %20, %cst_22 {dimension_numbers = #tpu.dot_dimension_numbers<[1], [0], [0], [1], [0, 0, 1, 1], [], []>} : vector<16x64xf32>, vector<64x128xf32>, vector<16x128xf32> -> vector<16x128xf32>
    %22 = arith.addf %17, %21 : vector<16x128xf32>
    %c0_23 = arith.constant 0 : index
    %c0_24 = arith.constant 0 : index
    %23 = vector.load %arg3[%c0_23, %c0_24] : memref<1x128xf32, #tpu.memory_space<vmem>>, vector<1x128xf32>
    %24 = vector.broadcast %23 : vector<1x128xf32> to vector<16x128xf32>
    %25 = arith.addf %22, %24 : vector<16x128xf32>
    %cst_25 = arith.constant 0.000000e+00 : f32
    %26 = vector.broadcast %cst_25 : f32 to vector<16x128xf32>
    %27 = arith.maximumf %25, %26 : vector<16x128xf32>
    %c8_26 = arith.constant 8 : index
    %c0_27 = arith.constant 0 : index
    %28 = vector.load %arg8[%c8_26, %c0_27] : memref<32x128xf32, #tpu.memory_space<vmem>>, vector<16x128xf32>
    tpu.vector_store %arg8[%c8_26, %c0_27], %27 {strides = array<i32>} : memref<32x128xf32, #tpu.memory_space<vmem>>, vector<16x128xf32>,
    %cst_28 = arith.constant 0.000000e+00 : f32
    %29 = vector.broadcast %cst_28 : f32 to vector<16x128xf32>
    %c7_29 = arith.constant 7 : index
    %c0_30 = arith.constant 0 : index
    %30 = vector.load %arg8[%c7_29, %c0_30] : memref<32x128xf32, #tpu.memory_space<vmem>>, vector<16x128xf32>
    %c0_31 = arith.constant 0 : index
    %c0_32 = arith.constant 0 : index
    %c0_33 = arith.constant 0 : index
    %31 = vector.load %arg4[%c0_31, %c0_32, %c0_33] : memref<3x128x128xf32, #tpu.memory_space<vmem>>, vector<1x128x128xf32>
    %32 = vector.shape_cast %31 : vector<1x128x128xf32> to vector<128x128xf32>
    %cst_34 = arith.constant dense<0.000000e+00> : vector<16x128xf32>
    %33 = tpu.matmul %30, %32, %cst_34 {dimension_numbers = #tpu.dot_dimension_numbers<[1], [0], [0], [1], [0, 0, 1, 1], [], []>} : vector<16x128xf32>, vector<128x128xf32>, vector<16x128xf32> -> vector<16x128xf32>
    %34 = arith.addf %29, %33 : vector<16x128xf32>
    %c8_35 = arith.constant 8 : index
    %c0_36 = arith.constant 0 : index
    %35 = vector.load %arg8[%c8_35, %c0_36] : memref<32x128xf32, #tpu.memory_space<vmem>>, vector<16x128xf32>
    %c1_37 = arith.constant 1 : index
    %c0_38 = arith.constant 0 : index
    %c0_39 = arith.constant 0 : index
    %36 = vector.load %arg4[%c1_37, %c0_38, %c0_39] : memref<3x128x128xf32, #tpu.memory_space<vmem>>, vector<1x128x128xf32>
    %37 = vector.shape_cast %36 : vector<1x128x128xf32> to vector<128x128xf32>
    %cst_40 = arith.constant dense<0.000000e+00> : vector<16x128xf32>
    %38 = tpu.matmul %35, %37, %cst_40 {dimension_numbers = #tpu.dot_dimension_numbers<[1], [0], [0], [1], [0, 0, 1, 1], [], []>} : vector<16x128xf32>, vector<128x128xf32>, vector<16x128xf32> -> vector<16x128xf32>
    %39 = arith.addf %34, %38 : vector<16x128xf32>
    %c9_41 = arith.constant 9 : index
    %c0_42 = arith.constant 0 : index
    %40 = vector.load %arg8[%c9_41, %c0_42] : memref<32x128xf32, #tpu.memory_space<vmem>>, vector<16x128xf32>
    %c2_43 = arith.constant 2 : index
    %c0_44 = arith.constant 0 : index
    %c0_45 = arith.constant 0 : index
    %41 = vector.load %arg4[%c2_43, %c0_44, %c0_45] : memref<3x128x128xf32, #tpu.memory_space<vmem>>, vector<1x128x128xf32>
    %42 = vector.shape_cast %41 : vector<1x128x128xf32> to vector<128x128xf32>
    %cst_46 = arith.constant dense<0.000000e+00> : vector<16x128xf32>
    %43 = tpu.matmul %40, %42, %cst_46 {dimension_numbers = #tpu.dot_dimension_numbers<[1], [0], [0], [1], [0, 0, 1, 1], [], []>} : vector<16x128xf32>, vector<128x128xf32>, vector<16x128xf32> -> vector<16x128xf32>
    %44 = arith.addf %39, %43 : vector<16x128xf32>
    %c0_47 = arith.constant 0 : index
    %c0_48 = arith.constant 0 : index
    %45 = vector.load %arg5[%c0_47, %c0_48] : memref<1x128xf32, #tpu.memory_space<vmem>>, vector<1x128xf32>
    %46 = vector.broadcast %45 : vector<1x128xf32> to vector<16x128xf32>
    %47 = arith.addf %44, %46 : vector<16x128xf32>
    %cst_49 = arith.constant 0.000000e+00 : f32
    %48 = vector.broadcast %cst_49 : f32 to vector<16x128xf32>
    %49 = arith.maximumf %47, %48 : vector<16x128xf32>
    %c0_50 = arith.constant 0 : index
    %c0_51 = arith.constant 0 : index
    %c0_52 = arith.constant 0 : index
    %50 = vector.load %arg6[%c0_50, %c0_51, %c0_52] : memref<1x16x128xf32, #tpu.memory_space<vmem>>, vector<1x16x128xf32>
    %51 = vector.shape_cast %50 : vector<1x16x128xf32> to vector<16x128xf32>
    %52 = vector.shape_cast %49 : vector<16x128xf32> to vector<1x16x128xf32>
    tpu.vector_store %arg6[%c0_50, %c0_51, %c0_52], %52 {strides = array<i32>} : memref<1x16x128xf32, #tpu.memory_space<vmem>>, vector<1x16x128xf32>,
    return
  }
  func.func @transform_0(%arg0: i32) -> (i32, i32, i32) {
    %c0_i32 = arith.constant 0 : i32
    %c0_i32_0 = arith.constant 0 : i32
    %c0_i32_1 = arith.constant 0 : i32
    return %arg0, %c0_i32, %c0_i32_0 : i32, i32, i32
  }
  func.func @transform_1(%arg0: i32) -> (i32, i32, i32) {
    %c0_i32 = arith.constant 0 : i32
    %c0_i32_0 = arith.constant 0 : i32
    %c0_i32_1 = arith.constant 0 : i32
    %c0_i32_2 = arith.constant 0 : i32
    return %c0_i32, %c0_i32_0, %c0_i32_1 : i32, i32, i32
  }
  func.func @transform_2(%arg0: i32) -> (i32, i32) {
    %c0_i32 = arith.constant 0 : i32
    %c0_i32_0 = arith.constant 0 : i32
    %c0_i32_1 = arith.constant 0 : i32
    return %c0_i32, %c0_i32_0 : i32, i32
  }
  func.func @transform_3(%arg0: i32) -> (i32, i32, i32) {
    %c0_i32 = arith.constant 0 : i32
    %c0_i32_0 = arith.constant 0 : i32
    %c0_i32_1 = arith.constant 0 : i32
    %c0_i32_2 = arith.constant 0 : i32
    return %c0_i32, %c0_i32_0, %c0_i32_1 : i32, i32, i32
  }
  func.func @transform_4(%arg0: i32) -> (i32, i32) {
    %c0_i32 = arith.constant 0 : i32
    %c0_i32_0 = arith.constant 0 : i32
    %c0_i32_1 = arith.constant 0 : i32
    return %c0_i32, %c0_i32_0 : i32, i32
  }
  func.func @transform_5(%arg0: i32) -> (i32, i32, i32) {
    %c0_i32 = arith.constant 0 : i32
    %c0_i32_0 = arith.constant 0 : i32
    %c0_i32_1 = arith.constant 0 : i32
    return %arg0, %c0_i32, %c0_i32_0 : i32, i32, i32
  }
}

</mosaic_0001>

<bundles_post_ra>
// kernel: tpu_custom_call.1
= control target key start
LH: loop header
LB: loop body
LE: loop exit
PB: predicated region body
PF: predicated region fallthrough
CT: control target
= control target key end

     0   :  { %10 = vsyncpa [#allocation5], 0  ;;  %s1937_s0 = inlined_call_operand.hbm [shape: f32[2,16,64], index: 0, kind: input, shape index: {}]   ;;  %s1938_s1 = inlined_call_operand.hbm [shape: f32[3,64,128], index: 1, kind: input, shape index: {}]   ;;  %s1939_s2 = inlined_call_operand.vmem [shape: f32[1,128], index: 2, kind: input, shape index: {}]   ;;  %s1940_s3 = inlined_call_operand.hbm [shape: f32[3,128,128], index: 3, kind: input, shape index: {}]   ;;  %s1941_s4 = inlined_call_operand.vmem [shape: f32[1,128], index: 4, kind: input, shape index: {}]   ;;  %s1942_s5 = inlined_call_operand.hbm [shape: f32[2,16,128], index: 5, kind: output, shape index: {}]  }
   0x1   :  { %12 = vsyncpa [#allocation5 + $0x1], 0 }
   0x2   :  { %13 = vsyncpa [#allocation8], 0 }
   0x3   :  { %14 = vsyncpa [#allocation6], 0 }
   0x4   :  { %16 = vsyncpa [#allocation6 + $0x1], 0  ;;  %s1672_s18 = smov 0   ;;  %s1674_s19 = smov 0  }
   0x5   :  { %s1676_s20 = smov 0   ;;  %s1678_s21 = smov 0  }
   0x6 LB: > { %s1693_s22 = sadd.s32 4294967295, %s1631_s21   ;;  %s977_s23 = sadd.s32 4294967294, %s1631_s21   ;;  %s1631_s21 = sphi %s1678_s21, %s1962_s21   ;;  %s1627_s20 = sphi %s1676_s20, %s1961_s20   ;;  %s1623_s19 = sphi %s1674_s19, %s1960_s19   ;;  %s1619_s18 = sphi %s1672_s18, %s1959_s18  }
   0x7   : > { %p42_p0 = scmp.ne.s32.totalorder %s1623_s19, %s1619_s18  ;;  %p1943_p1 = scmp.eq.s32.totalorder %s1693_s22, 0 }
   0x8   : > { %p156_p3 = scmp.eq.s32.totalorder %s977_s23, 1  ;;  %p978_p5 = scmp.ge.s32.totalorder %s1631_s21, 1 }
   0x9   : > { %p1702_p4 = por %p1943_p1, %p42_p0  ;;  %p163_p7 = scmp.lt.s32.totalorder %s1631_s21, 3 }
   0xa   : > { %p1707_p6 = por %p156_p3, %p42_p0  ;;  %s1633_s27 = smov [#allocation7]  }
   0xb   : > { %s1946_s24 = scalar_select %p1702_p4, 1, 0 }
   0xc   : > { %s1947_s25 = scalar_select %p1707_p6, 1, 0 }
   0xd   : > { %p1712_p8 = pnand %p978_p5, %p163_p7  ;;  %s175_s28 = sshll.u32 %s1633_s27, 4  ;;  %s1716_s28 = int_to_ptr.vmem [resolvable:$true] %s175_s28 }
   0xe   : > { %s1634_s30 = smov [#allocation9]   ;;  %s1475_s9 = scalar_lea.hbm %s1938_s1, 3072 }
   0xf   : > { %p1415_p9 = pneg %p1712_p8  ;;  %s191_s6 = sshll.u32 %s1634_s30, 4  ;;  %s1727_s6 = int_to_ptr.vmem [resolvable:$true] %s191_s6 }
  0x10   : > { %p1476_p12 = scmp.ne.s32.totalorder %s1938_s1, %s1475_s9  ;;  %p1482_p5 = scmp.lt.u32.totalorder %s1475_s9, %s1938_s1 }
  0x11   : > { %p1723_p11 = pnand %p1415_p9, %p1943_p1 }
  0x13   : > { %p1477_p13 = pneg %p1723_p11 }
  0x15   : > { %p1478_p0 = pnand %p1477_p13, %p1476_p12 }
  0x17   : > { %p1479_p3 = pneg %p1478_p0 }
  0x19   : > { %p1484_p7 = pnand %p1482_p5, %p1479_p3 }
  0x1b   : > { %1487 = shalt.err (!%p1484_p7)
}
  0x1c   : > { %s1488_s14 = scalar_lea.vmem %s1716_s28, 3072  ;;  %p1496_p2 = scmp.lt.s32.totalorder %s1716_s28, %s1716_s28 }
  0x1d   : > { %p1489_p9 = scmp.ne.s32.totalorder %s1716_s28, %s1488_s14  ;;  %p1497_p12 = scmp.lt.s32.totalorder %s1488_s14, %s1488_s14 }
  0x1f   : > { %p1491_p10 = pnand %p1489_p9, %p1477_p13  ;;  %p1498_p0 = por %p1497_p12, %p1496_p2 }
  0x21   : > { %p1492_p1 = pneg %p1491_p10 }
  0x23   : > { %p1499_p6 = pnand %p1498_p0, %p1492_p1 }
  0x25   : > { %1502 = shalt.err (!%p1499_p6)
}
  0x26   : > { %s1635_s15 = smov 128   ;;  %s1636_s16 = smov 8  }
  0x27   : > { %1418 = dma.hbm_to_vmem [thread:$0]  (!%p1723_p11), %s1938_s1, 3072, %s1716_s28, [#allocation8], %s1635_s15, %s1635_s15, %s1636_s16  }
  0x28   : > { %s1503_s7 = scalar_lea.hbm %s1940_s3, 6144 }
  0x29   : > { %p1504_p1 = scmp.ne.s32.totalorder %s1940_s3, %s1503_s7  ;;  %p1510_p10 = scmp.lt.u32.totalorder %s1503_s7, %s1940_s3 }
  0x2b   : > { %p1506_p2 = pnand %p1504_p1, %p1477_p13 }
  0x2d   : > { %p1507_p6 = pneg %p1506_p2 }
  0x2f   : > { %p1512_p3 = pnand %p1510_p10, %p1507_p6 }
  0x31   : > { %1515 = shalt.err (!%p1512_p3)
}
  0x32   : > { %s1516_s28 = scalar_lea.vmem %s1727_s6, 6144  ;;  %p1524_p12 = scmp.lt.s32.totalorder %s1727_s6, %s1727_s6 }
  0x33   : > { %p1517_p5 = scmp.ne.s32.totalorder %s1727_s6, %s1516_s28  ;;  %p1525_p0 = scmp.lt.s32.totalorder %s1516_s28, %s1516_s28 }
  0x35   : > { %p1519_p7 = pnand %p1517_p5, %p1477_p13  ;;  %p1526_p1 = por %p1525_p0, %p1524_p12 }
  0x37   : > { %p1520_p9 = pneg %p1519_p7 }
  0x39   : > { %p1527_p2 = pnand %p1526_p1, %p1520_p9 }
  0x3b   : > { %1530 = shalt.err (!%p1527_p2)
}
  0x3c   : > { %1421 = dma.hbm_to_vmem [thread:$0]  (!%p1723_p11), %s1940_s3, 6144, %s1727_s6, [#allocation8], %s1635_s15, %s1635_s15, %s1636_s16  }
  0x3d   : > { %s1788_s29 = sadd.s32 1, %s1631_s21   ;;  %s29_s14 = sadd.s32 1, %s1627_s20 }
  0x3e   : > { %s26_s17 = ssub.s32 %s1631_s21, %s1788_s29  ;;  %p36_p13 = scmp.ne.s32.totalorder %s1627_s20, %s1623_s19 }
  0x3f   : > { %p27_p6 = scmp.eq.s32.totalorder %s26_s17, 0  ;;  %p37_p10 = scmp.eq.s32.totalorder %s1631_s21, 0 }
  0x40   : > { %p1950_p3 = scmp.eq.s32.totalorder %s1693_s22, 1  ;;  %p1432_p7 = scmp.lt.s32.totalorder %s1631_s21, 2 }
  0x41   : > { %s1804_s27 = scalar_select %p27_p6, %s1627_s20, %s29_s14  }
  0x42   : > { %p1798_p5 = por %p1950_p3, %p36_p13  ;;  %p38_p9 = por %p37_p10, %p36_p13 }
  0x43   : > { %s208_s30 = sand.u32 1, %s1627_s20   ;;  %s1003_s6 = sshll.u32 %s1631_s21, 8 }
  0x44   : > { %s1951_s23 = scalar_select %p1798_p5, 1, 0 }
  0x45   : > { %s982_s7 = sshll.u32 %s208_s30, 4  ;;  %s1811_s10 = scalar_lea.hbm %s1937_s0, %s1003_s6 }
  0x46   : > { %s212_s11 = scalar_lea.vmem [#allocation4], %s982_s7  ;;  %p1815_p11 = pnand %p1432_p7, %p38_p9 }
  0x47   : > { %s219_s28 = sshll.u32 %s212_s11, 4  ;;  %s1819_s13 = scalar_lea.sflag [#allocation5], %s208_s30  ;;  %s1813_s28 = int_to_ptr.vmem [resolvable:$true] %s219_s28 }
  0x48   : > { %s1531_s14 = scalar_lea.hbm %s1811_s10, 256  ;;  %p1533_p0 = pneg %p1815_p11 }
  0x49   : > { %p1532_p12 = scmp.ne.s32.totalorder %s1811_s10, %s1531_s14  ;;  %s1536_s6 = scalar_lea.hbm %s1937_s0, 512 }
  0x4a   : > { %p1537_p13 = scmp.lt.u32.totalorder %s1811_s10, %s1937_s0  ;;  %p1538_p6 = scmp.lt.u32.totalorder %s1536_s6, %s1531_s14 }
  0x4b   : > { %p1534_p1 = pnand %p1533_p0, %p1532_p12  ;;  %p1540_p3 = scmp.lt.u32.totalorder %s1531_s14, %s1811_s10 }
  0x4c   : > { %p1539_p10 = por %p1538_p6, %p1537_p13 }
  0x4d   : > { %p1535_p2 = pneg %p1534_p1 }
  0x4e   : > { %p1541_p7 = por %p1540_p3, %p1539_p10 }
  0x50   : > { %p1542_p9 = pnand %p1541_p7, %p1535_p2 }
  0x52   : > { %1545 = shalt.err (!%p1542_p9)
}
  0x53   : > { %s1546_s30 = scalar_lea.vmem %s1813_s28, 256  ;;  %s1637_s11 = smov [#allocation4]  }
  0x54   : > { %p1547_p12 = scmp.ne.s32.totalorder %s1813_s28, %s1546_s30  ;;  %s1551_s17 = sshll.u32 %s1637_s11, 4  ;;  %s1552_s17 = int_to_ptr.vmem [resolvable:$false] %s1551_s17 }
  0x55   : > { %s1553_s7 = scalar_lea.vmem %s1552_s17, 512  ;;  %p1554_p4 = scmp.lt.s32.totalorder %s1813_s28, %s1552_s17 }
  0x56   : > { %p1549_p1 = pnand %p1547_p12, %p1533_p0  ;;  %p1555_p13 = scmp.lt.s32.totalorder %s1553_s7, %s1546_s30 }
  0x58   : > { %p1550_p5 = pneg %p1549_p1  ;;  %p1556_p6 = por %p1555_p13, %p1554_p4 }
  0x5a   : > { %p1557_p10 = pnand %p1556_p6, %p1550_p5 }
  0x5c   : > { %1560 = shalt.err (!%p1557_p10)
}
  0x5d   : > { %1425 = dma.hbm_to_vmem [thread:$0]  (!%p1815_p11), %s1811_s10, 256, %s1813_s28, %s1819_s13, %s1635_s15, %s1635_s15, %s1636_s16  }
  0x5e   : > { %231 = sbr.rel (%p1712_p8) target bundleno = 648 (0x288), region = 40  ;;  %s1853_s14 = sand.u32 (!%p1712_p8), 1, %s1623_s19  }
  0x5f   : > { %s986_s6 = sshll.u32 (!%p1712_p8), %s1853_s14, 4  ;;  %s234_s8 = scalar_lea.sflag (!%p1712_p8), [#allocation5], %s1853_s14 }
  0x60   : > { %s237_s12 = scalar_lea.vmem (!%p1712_p8), [#allocation4], %s986_s6  ;;  %p1953_p4 = scmp.ne.s32.totalorder (!%p1712_p8), %s1946_s24, 0 }
  0x65   : > { %1606 = dma.done.wait (%p1953_p4), %s234_s8, 256  }
  0x66   : > { %1608 = vsyncadd (%p1953_p4), %s234_s8, 4294967040  ;;  %p1954_p5 = scmp.eq.s32.totalorder %s1693_s22, 0 }
  0x68   : > { %1610 = dma.done.wait (%p1954_p5), [#allocation8], 9216   ;;  %p1955_p8 = pmov %p1954_p5 }
  0x69   : > { %vm272_vm0 = vcmask 523264   ;;  %v1638_v0 = vmov 0.0   ;;  %v298_v1 = vld [vmem:[#allocation7 + $0x40] sm:$0xff]  ;;  %v299_v2 = vld [vmem:[#allocation7 + $0x48] sm:$0xff]  ;;  %v300_v3 = vld [vmem:[#allocation7 + $0x50] sm:$0xff]  ;;  %s271_s10 = scalar_lea.vmem [#allocation10], %s986_s6 }
  0x6a   : > { %1612 = vsyncadd (%p1955_p8), [#allocation8], 4294958080  ;;  %274 = vst.msk [vmem:[#allocation2 + $0x8] sm:$0xff] %vm272_vm0, %v1638_v0  ;;  %v1251_v4 = vpack.c.bf16 %v299_v2, %v298_v1  ;;  %v301_v5 = vld [vmem:[#allocation7 + $0x58] sm:$0xff]  ;;  %v302_v7 = vld [vmem:[#allocation7 + $0x60] sm:$0xff]  ;;  %s885_s28 = sshll.u32 %s271_s10, 4  ;;  %s1888_s28 = int_to_ptr.vmem [resolvable:$true] %s885_s28 }
  0x6b   : > { %273 = vst.msk [vmem:[#allocation2] sm:$0xff] %vm272_vm0, %v1638_v0  ;;  %275 = vst.msk [vmem:[#allocation2 + $0x10] sm:$0xff] %vm272_vm0, %v1638_v0  ;;  %v1255_v6 = vpack.c.bf16 %v301_v5, %v300_v3  ;;  %v303_v8 = vld [vmem:[#allocation7 + $0x68] sm:$0xff]  ;;  %v281_v9 = vld [vmem:[%s237_s12] sm:$0xff]  ;;  %s1004_s13 = sshll.u32 %s1693_s22, 8  ;;  %s872_s17 = scalar_lea.sflag [#allocation6], %s1853_s14 }
  0x6c   : > { %276 = vst.msk [vmem:[#allocation2 + $0x18] sm:$0xff] %vm272_vm0, %v1638_v0  ;;  %277 = vst [vmem:[#allocation3] sm:$0xff] %v1638_v0  ;;  %1252 = vmatprep.subr.bf16.mxu0 %v1251_v4  ;;  %v282_v10 = vld [vmem:[%s237_s12 + $0x8] sm:$0xff]  ;;  %v1259_v11 = vpack.c.bf16 %v303_v8, %v302_v7  ;;  %v304_v12 = vld [vmem:[#allocation7 + $0x70] sm:$0xff]  ;;  %s1893_s11 = scalar_lea.hbm %s1942_s5, %s1004_s13  ;;  %s1561_s7 = scalar_lea.vmem %s1888_s28, 256 }
  0x6d   : > { %280 = vst [vmem:[#allocation3 + $0x18] sm:$0xff] %v1638_v0  ;;  %283 = vst.msk [vmem:[#allocation2 + $0x8] sm:$0xff] %vm272_vm0, %v281_v9  ;;  %1254 = vmatpush3.bf16.msra.mxu0 %v1251_v4  ;;  %v305_v13 = vld [vmem:[#allocation7 + $0x78] sm:$0xff]  ;;  %v577_v14 = vld [vmem:[#allocation9] sm:$0xff]  ;;  %p1562_p11 = scmp.ne.s32.totalorder %s1888_s28, %s1561_s7  ;;  %p1956_p0 = scmp.ne.s32.totalorder %s1951_s23, 0 }
  0x6e   : > { %284 = vst.msk [vmem:[#allocation2 + $0x10] sm:$0xff] %vm272_vm0, %v282_v10  ;;  %1256 = vmatprep.subr.bf16.mxu0 %v1255_v6  ;;  %v1263_v15 = vpack.c.bf16 %v305_v13, %v304_v12  ;;  %v287_v16 = vld [vmem:[#allocation7] sm:$0xff]  ;;  %v578_v17 = vld [vmem:[#allocation9 + $0x8] sm:$0xff]  ;;  %v579_v21 = vld [vmem:[#allocation9 + $0x10] sm:$0xff]  ;;  %s1639_s22 = smov [#allocation10]  }
  0x6f   : > { %v288_v19 = vld [vmem:[#allocation7 + $0x8] sm:$0xff]  ;;  %v1331_v20 = vpack.c.bf16 %v578_v17, %v577_v14  ;;  %v580_v22 = vld [vmem:[#allocation9 + $0x18] sm:$0xff]  ;;  %v581_v25 = vld [vmem:[#allocation9 + $0x20] sm:$0xff]  ;;  %p1563_p2 = pnand %p1562_p11, %p1956_p0  ;;  %s1565_s6 = sshll.u32 %s1639_s22, 4  ;;  %s1566_s6 = int_to_ptr.vmem [resolvable:$false] %s1565_s6 }
  0x70   : > { %v1267_v23 = vpack.c.bf16 %v288_v19, %v287_v16  ;;  %v1335_v24 = vpack.c.bf16 %v580_v22, %v579_v21  ;;  %v582_v26 = vld [vmem:[#allocation9 + $0x28] sm:$0xff]  ;;  %v289_v27 = vld [vmem:[#allocation7 + $0x10] sm:$0xff]  ;;  %v290_v28 = vld [vmem:[#allocation7 + $0x18] sm:$0xff]  ;;  %s1567_s8 = scalar_lea.vmem %s1566_s6, 512  ;;  %p1568_p7 = scmp.lt.s32.totalorder %s1888_s28, %s1566_s6 }
  0x71   : > { %1258 = vmatpush3.bf16.msra.mxu0 %v1255_v6  ;;  %1332 = vmatprep.subr.bf16.mxu1 %v1331_v20  ;;  %v1339_v29 = vpack.c.bf16 %v582_v26, %v581_v25  ;;  %v583_v30 = vld [vmem:[#allocation9 + $0x30] sm:$0xff]  ;;  %v584_v31 = vld [vmem:[#allocation9 + $0x38] sm:$0xff]  ;;  %v1271_v33 = vpack.c.bf16 %v290_v28, %v289_v27  ;;  %v291_v35 = vld [vmem:[#allocation7 + $0x20] sm:$0xff]  ;;  %p1564_p3 = pneg %p1563_p2  ;;  %p1569_p9 = scmp.lt.s32.totalorder %s1567_s8, %s1561_s7 }
  0x72   : > { %1260 = vmatprep.subr.bf16.mxu0 %v1259_v11  ;;  %1334 = vmatpush3.bf16.msra.mxu1 %v1331_v20  ;;  %v292_v36 = vld [vmem:[#allocation7 + $0x28] sm:$0xff]  ;;  %v1343_v37 = vpack.c.bf16 %v584_v31, %v583_v30  ;;  %v585_v38 = vld [vmem:[#allocation9 + $0x40] sm:$0xff]  ;;  %v293_v41 = vld [vmem:[#allocation7 + $0x30] sm:$0xff] }
  0x73   : > { %1336 = vmatprep.subr.bf16.mxu1 %v1335_v24  ;;  %v586_v39 = vld [vmem:[#allocation9 + $0x48] sm:$0xff]  ;;  %v1275_v40 = vpack.c.bf16 %v292_v36, %v291_v35  ;;  %v294_v42 = vld [vmem:[#allocation7 + $0x38] sm:$0xff]  ;;  %v471_v45 = vld [vmem:[#allocation7 + $0x80] sm:$0xff]  ;;  %p1570_p12 = por %p1569_p9, %p1568_p7 }
  0x74   : > { %v295_v18 = vld [vmem:[#allocation2 + $0x8] sm:$0xff]  ;;  %v1347_v43 = vpack.c.bf16 %v586_v39, %v585_v38  ;;  %v1279_v44 = vpack.c.bf16 %v294_v42, %v293_v41  ;;  %v473_v48 = vld [vmem:[#allocation7 + $0x90] sm:$0xff]  ;;  %v474_v49 = vld [vmem:[#allocation7 + $0x98] sm:$0xff] }
  0x75   : > { %1105 = vmatprep.mubr.msk.f32.mxu0 %vm272_vm0, %v295_v18  ;;  %1262 = vmatpush3.bf16.msra.mxu0 %v1259_v11  ;;  %v296_v32 = vld [vmem:[#allocation2 + $0x10] sm:$0xff]  ;;  %v285_v34 = vld [vmem:[#allocation2 + $0x7] sm:$0xff]  ;;  %v1287_v51 = vpack.c.bf16 %v474_v49, %v473_v48  ;;  %v478_v57 = vld [vmem:[#allocation7 + $0xb8] sm:$0xff]  ;;  %p1571_p1 = pnand %p1570_p12, %p1564_p3 }
  0x76   : > { %1264 = vmatprep.subr.bf16.mxu0 %v1263_v15  ;;  %1338 = vmatpush3.bf16.msra.mxu1 %v1335_v24  ;;  %v472_v46 = vld [vmem:[#allocation7 + $0x88] sm:$0xff]  ;;  %v475_v53 = vld [vmem:[#allocation7 + $0xa0] sm:$0xff]  ;;  %v477_v56 = vld [vmem:[#allocation7 + $0xb0] sm:$0xff] }
  0x77   : > { %1340 = vmatprep.subr.bf16.mxu1 %v1339_v29  ;;  %v1283_v47 = vpack.c.bf16 %v472_v46, %v471_v45  ;;  %v286_v50 = vld [vmem:[#allocation2 + $0xf] sm:$0xff]  ;;  %v1295_v58 = vpack.c.bf16 %v478_v57, %v477_v56  ;;  %v596_v59 = vld [vmem:[#allocation9 + $0x80] sm:$0xff]  ;;  %v599_v63 = vld [vmem:[#allocation9 + $0x98] sm:$0xff] }
  0x78   : > { %v468_v52 = vld [vmem:[#allocation2 + $0x9] sm:$0xff]  ;;  %v469_v0 = vld [vmem:[#allocation2 + $0x11] sm:$0xff]  ;;  %v600_v2 = vld [vmem:[#allocation9 + $0xa0] sm:$0xff] }
  0x79   : > { %1266 = vmatpush3.bf16.msra.mxu0 %v1263_v15  ;;  %v476_v54 = vld [vmem:[#allocation7 + $0xa8] sm:$0xff]  ;;  %v598_v62 = vld [vmem:[#allocation9 + $0x90] sm:$0xff]  ;;  %v603_v6 = vld [vmem:[#allocation9 + $0xb8] sm:$0xff] }
  0x7a   : > { %1268 = vmatprep.subr.bf16.mxu0 %v1267_v23  ;;  %1342 = vmatpush3.bf16.msra.mxu1 %v1339_v29  ;;  %v1291_v55 = vpack.c.bf16 %v476_v54, %v475_v53  ;;  %v597_v60 = vld [vmem:[#allocation9 + $0x88] sm:$0xff]  ;;  %v1303_v1 = vpack.c.bf16 %v599_v63, %v598_v62  ;;  %v602_v5 = vld [vmem:[#allocation9 + $0xb0] sm:$0xff]  ;;  %v604_v8 = vld [vmem:[#allocation9 + $0xc0] sm:$0xff] }
  0x7b   : > { %1344 = vmatprep.subr.bf16.mxu1 %v1343_v37  ;;  %v1299_v61 = vpack.c.bf16 %v597_v60, %v596_v59  ;;  %v601_v3 = vld [vmem:[#allocation9 + $0xa8] sm:$0xff]  ;;  %v1311_v7 = vpack.c.bf16 %v603_v6, %v602_v5  ;;  %v606_v11 = vld [vmem:[#allocation9 + $0xd0] sm:$0xff]  ;;  %v607_v12 = vld [vmem:[#allocation9 + $0xd8] sm:$0xff] }
  0x7c   : > { %1106 = vmatmul.mubr.msk.f32.vlgmr.msra.gmra.mrb[0].mxu0 %vm272_vm0, %v296_v32  ;;  %v1307_v4 = vpack.c.bf16 %v601_v3, %v600_v2  ;;  %v605_v9 = vld [vmem:[#allocation9 + $0xc8] sm:$0xff]  ;;  %v1319_v13 = vpack.c.bf16 %v607_v12, %v606_v11  ;;  %v608_v14 = vld [vmem:[#allocation9 + $0xe0] sm:$0xff]  ;;  %v587_v17 = vld [vmem:[#allocation9 + $0x50] sm:$0xff] }
  0x7d   : > { %1270 = vmatpush3.bf16.msra.mxu0 %v1267_v23  ;;  %1124 = vmatprep.mubr.msk.f32.mxu0 %vm272_vm0, %v285_v34  ;;  %v1315_v10 = vpack.c.bf16 %v605_v9, %v604_v8  ;;  %v609_v15 = vld [vmem:[#allocation9 + $0xe8] sm:$0xff]  ;;  %v588_v18 = vld [vmem:[#allocation9 + $0x58] sm:$0xff]  ;;  %v610_v20 = vld [vmem:[#allocation9 + $0xf0] sm:$0xff] }
  0x7e   : > { %1272 = vmatprep.subr.bf16.mxu0 %v1271_v33  ;;  %1346 = vmatpush3.bf16.msra.mxu1 %v1343_v37  ;;  %v1323_v16 = vpack.c.bf16 %v609_v15, %v608_v14  ;;  %v1351_v19 = vpack.c.bf16 %v588_v18, %v587_v17  ;;  %v611_v21 = vld [vmem:[#allocation9 + $0xf8] sm:$0xff]  ;;  %v589_v23 = vld [vmem:[#allocation9 + $0x60] sm:$0xff]  ;;  %v590_v24 = vld [vmem:[#allocation9 + $0x68] sm:$0xff] }
  0x7f   : > { %1348 = vmatprep.subr.bf16.mxu1 %v1347_v43  ;;  %v1327_v22 = vpack.c.bf16 %v611_v21, %v610_v20  ;;  %v1355_v25 = vpack.c.bf16 %v590_v24, %v589_v23  ;;  %v591_v26 = vld [vmem:[#allocation9 + $0x70] sm:$0xff]  ;;  %v592_v27 = vld [vmem:[#allocation9 + $0x78] sm:$0xff]  ;;  %v765_v29 = vld [vmem:[#allocation9 + $0x100] sm:$0xff] }
  0x80   : > { %v1359_v28 = vpack.c.bf16 %v592_v27, %v591_v26  ;;  %v766_v30 = vld [vmem:[#allocation9 + $0x108] sm:$0xff]  ;;  %v996_v32 = vld [vmem:[%s1939_s2] ss:$0 sm:$0xff]  ;;  %v767_v39 = vld [vmem:[#allocation9 + $0x110] sm:$0xff] }
  0x81   : > { %1274 = vmatpush3.bf16.msra.mxu0 %v1271_v33  ;;  %v1363_v31 = vpack.c.bf16 %v766_v30, %v765_v29  ;;  %v770_v45 = vld [vmem:[#allocation9 + $0x128] sm:$0xff]  ;;  %v771_v48 = vld [vmem:[#allocation9 + $0x130] sm:$0xff]  ;;  %v772_v49 = vld [vmem:[#allocation9 + $0x138] sm:$0xff] }
  0x82   : > { %1276 = vmatprep.subr.bf16.mxu0 %v1275_v40  ;;  %1350 = vmatpush3.bf16.msra.mxu1 %v1347_v43  ;;  %v775_v54 = vld [vmem:[#allocation9 + $0x150] sm:$0xff]  ;;  %v777_v57 = vld [vmem:[#allocation9 + $0x160] sm:$0xff] }
  0x83   : > { %1352 = vmatprep.subr.bf16.mxu1 %v1351_v19  ;;  %v779_v60 = vld [vmem:[#allocation9 + $0x170] sm:$0xff]  ;;  %v997_v3 = vld [vmem:[%s1941_s4] ss:$0 sm:$0xff] }
  0x85   : > { %1278 = vmatpush3.bf16.msra.mxu0 %v1275_v40  ;;  %v768_v40 = vld [vmem:[#allocation9 + $0x118] sm:$0xff] }
  0x86   : > { %1280 = vmatprep.subr.bf16.mxu0 %v1279_v44  ;;  %1354 = vmatpush3.bf16.msra.mxu1 %v1351_v19  ;;  %v1367_v43 = vpack.c.bf16 %v768_v40, %v767_v39 }
  0x87   : > { %1356 = vmatprep.subr.bf16.mxu1 %v1355_v25 }
  0x89   : > { %1282 = vmatpush3.bf16.msra.mxu0 %v1279_v44  ;;  %v769_v44 = vld [vmem:[#allocation9 + $0x120] sm:$0xff] }
  0x8a   : > { %1284 = vmatprep.subr.bf16.mxu0 %v1283_v47  ;;  %1358 = vmatpush3.bf16.msra.mxu1 %v1355_v25 }
  0x8b   : > { %1360 = vmatprep.subr.bf16.mxu1 %v1359_v28 }
  0x8c   : > { %1125 = vmatmul.mubr.msk.f32.vlgmr.msra.gmra.mrb[0].mxu0 %vm272_vm0, %v286_v50  ;;  %v1375_v50 = vpack.c.bf16 %v772_v49, %v771_v48 }
  0x8d   : > { %1286 = vmatpush3.bf16.msra.mxu0 %v1283_v47  ;;  %1143 = vmatprep.mubr.msk.f32.mxu0 %vm272_vm0, %v468_v52  ;;  %v1371_v47 = vpack.c.bf16 %v770_v45, %v769_v44  ;;  %v774_v52 = vld [vmem:[#allocation9 + $0x148] sm:$0xff] }
  0x8e   : > { %1288 = vmatprep.subr.bf16.mxu0 %v1287_v51  ;;  %1362 = vmatpush3.bf16.msra.mxu1 %v1359_v28 }
  0x8f   : > { %1364 = vmatprep.subr.bf16.mxu1 %v1363_v31 }
  0x91   : > { %1290 = vmatpush3.bf16.msra.mxu0 %v1287_v51  ;;  %v773_v51 = vld [vmem:[#allocation9 + $0x140] sm:$0xff] }
  0x92   : > { %1292 = vmatprep.subr.bf16.mxu0 %v1291_v55  ;;  %v1379_v53 = vpack.c.bf16 %v774_v52, %v773_v51 }
  0x95   : > { %1294 = vmatpush3.bf16.msra.mxu0 %v1291_v55  ;;  %v776_v55 = vld [vmem:[#allocation9 + $0x158] sm:$0xff] }
  0x96   : > { %1296 = vmatprep.subr.bf16.mxu0 %v1295_v58  ;;  %v1383_v56 = vpack.c.bf16 %v776_v55, %v775_v54 }
  0x99   : > { %1298 = vmatpush3.bf16.msra.mxu0 %v1295_v58  ;;  %v778_v58 = vld [vmem:[#allocation9 + $0x168] sm:$0xff] }
  0x9a   : > { %1300 = vmatprep.subr.bf16.mxu0 %v1299_v61  ;;  %v1387_v59 = vpack.c.bf16 %v778_v58, %v777_v57 }
  0x9c   : > { %1144 = vmatmul.mubr.msk.f32.vlgmr.msra.gmra.mrb[0].mxu0 %vm272_vm0, %v469_v0 }
  0x9d   : > { %1302 = vmatpush3.bf16.msra.mxu0 %v1299_v61  ;;  %v780_v61 = vld [vmem:[#allocation9 + $0x178] sm:$0xff] }
  0x9e   : > { %1304 = vmatprep.subr.bf16.mxu0 %v1303_v1  ;;  %v1391_v62 = vpack.c.bf16 %v780_v61, %v779_v60 }
  0xa1   : > { %1306 = vmatpush3.bf16.msra.mxu0 %v1303_v1 }
  0xa2   : > { %1308 = vmatprep.subr.bf16.mxu0 %v1307_v4 }
  0xa5   : > { %1310 = vmatpush3.bf16.msra.mxu0 %v1307_v4 }
  0xa6   : > { %1312 = vmatprep.subr.bf16.mxu0 %v1311_v7 }
  0xa9   : > { %1314 = vmatpush3.bf16.msra.mxu0 %v1311_v7 }
  0xaa   : > { %1316 = vmatprep.subr.bf16.mxu0 %v1315_v10 }
  0xad   : > { %1318 = vmatpush3.bf16.msra.mxu0 %v1315_v10 }
  0xae   : > { %1320 = vmatprep.subr.bf16.mxu0 %v1319_v13 }
  0xb1   : > { %1322 = vmatpush3.bf16.msra.mxu0 %v1319_v13 }
  0xb2   : > { %1324 = vmatprep.subr.bf16.mxu0 %v1323_v16 }
  0xb5   : > { %1326 = vmatpush3.bf16.msra.mxu0 %v1323_v16 }
  0xb6   : > { %1328 = vmatprep.subr.bf16.mxu0 %v1327_v22 }
  0xb9   : > { %1330 = vmatpush3.bf16.msra.mxu0 %v1327_v22 }
 0x16f   : > { %v1145_v33 = vpop.f32.mrb[0].mxu0 }
 0x170   : > { %v570_v34 = vadd.f32 %v1145_v33, %v996_v32  ;;  %v551_v35 = vpop.f32.mrb[1].mxu0 }
 0x171   : > { %v569_v36 = vadd.f32 %v996_v32, %v551_v35 }
 0x172   : > { %v572_v37 = vmax.f32 %v570_v34, 0.0 }
 0x173   : > { %v571_v38 = vmax.f32 %v569_v36, 0.0 }
 0x174   : > { %574 = vst [vmem:[#allocation3 + $0x10] sm:$0xff] %v572_v37 }
 0x175   : > { %573 = vst [vmem:[#allocation3 + $0x8] sm:$0xff] %v571_v38  ;;  %1178 = vmatprep.mubr.f32.mxu0 %v571_v38 }
 0x176   : > { %1179 = vmatmul.mubr.f32.vlgmr.msra.gmra.mrb[2].mxu0 %v572_v37 }
 0x17b   : > { %v763_v63 = vld [vmem:[#allocation3 + $0x11] sm:$0xff] }
 0x17c   : > { %v575_v41 = vld [vmem:[#allocation3 + $0x7] sm:$0xff]  ;;  %v576_v42 = vld [vmem:[#allocation3 + $0xf] sm:$0xff] }
 0x17d   : > { %1213 = vmatprep.mubr.f32.mxu1 %v575_v41  ;;  %v762_v46 = vld [vmem:[#allocation3 + $0x9] sm:$0xff] }
 0x17e   : > { %1214 = vmatmul.mubr.f32.vlgmr.msra.gmra.mrb[0].mxu1 %v576_v42 }
 0x17f   : > { %1366 = vmatpush3.bf16.msra.mxu1 %v1363_v31  ;;  %1248 = vmatprep.mubr.f32.mxu1 %v762_v46 }
 0x180   : > { %1368 = vmatprep.subr.bf16.mxu1 %v1367_v43 }
 0x183   : > { %1370 = vmatpush3.bf16.msra.mxu1 %v1367_v43 }
 0x184   : > { %1372 = vmatprep.subr.bf16.mxu1 %v1371_v47 }
 0x187   : > { %1374 = vmatpush3.bf16.msra.mxu1 %v1371_v47 }
 0x188   : > { %1376 = vmatprep.subr.bf16.mxu1 %v1375_v50 }
 0x18b   : > { %1378 = vmatpush3.bf16.msra.mxu1 %v1375_v50 }
 0x18c   : > { %1380 = vmatprep.subr.bf16.mxu1 %v1379_v53 }
 0x18f   : > { %1382 = vmatpush3.bf16.msra.mxu1 %v1379_v53 }
 0x190   : > { %1384 = vmatprep.subr.bf16.mxu1 %v1383_v56 }
 0x193   : > { %1386 = vmatpush3.bf16.msra.mxu1 %v1383_v56 }
 0x194   : > { %1388 = vmatprep.subr.bf16.mxu1 %v1387_v59 }
 0x197   : > { %1390 = vmatpush3.bf16.msra.mxu1 %v1387_v59 }
 0x198   : > { %1392 = vmatprep.subr.bf16.mxu1 %v1391_v62 }
 0x19b   : > { %1394 = vmatpush3.bf16.msra.mxu1 %v1391_v62 }
 0x19e   : > { %1249 = vmatmul.mubr.f32.vlgmr.msra.gmra.mrb[0].mxu1 %v763_v63 }
 0x249   : > { %v1180_v0 = vpop.f32.mrb[2].mxu0 }
 0x24a   : > { %v678_v1 = vpop.f32.mrb[3].mxu0 }
 0x271   : > { %v1250_v2 = vpop.f32.mrb[0].mxu1 }
 0x272   : > { %v1395_v4 = vadd.f32 %v1250_v2, %v1180_v0  ;;  %v847_v5 = vpop.f32.mrb[1].mxu1 }
 0x273   : > { %v1396_v6 = vadd.f32 %v847_v5, %v678_v1 }
 0x274   : > { %v866_v7 = vadd.f32 %v1395_v4, %v997_v3 }
 0x275   : > { %v865_v8 = vadd.f32 %v1396_v6, %v997_v3 }
 0x276   : > { %v868_v9 = vmax.f32 %v866_v7, 0.0 }
 0x277   : > { %v867_v10 = vmax.f32 %v865_v8, 0.0 }
 0x278   : > { %870 = vst [vmem:[%s271_s10 + $0x8] sm:$0xff] %v868_v9 }
 0x279   : > { %869 = vst [vmem:[%s271_s10] sm:$0xff] %v867_v10 }
 0x27a   : > { %1574 = shalt.err (!%p1571_p1)
}
 0x27b   : > { %s1575_s12 = scalar_lea.hbm %s1893_s11, 256  ;;  %s1579_s15 = scalar_lea.hbm %s1942_s5, 512 }
 0x27c   : > { %p1576_p13 = scmp.ne.s32.totalorder %s1893_s11, %s1575_s12  ;;  %p1580_p4 = scmp.lt.u32.totalorder %s1893_s11, %s1942_s5 }
 0x27d   : > { %p1581_p5 = scmp.lt.u32.totalorder %s1579_s15, %s1575_s12  ;;  %p1583_p11 = scmp.lt.u32.totalorder %s1575_s12, %s1893_s11 }
 0x27e   : > { %p1577_p6 = pnand %p1576_p13, %p1956_p0 }
 0x27f   : > { %p1582_p8 = por %p1581_p5, %p1580_p4 }
 0x280   : > { %p1578_p10 = pneg %p1577_p6 }
 0x281   : > { %p1584_p2 = por %p1583_p11, %p1582_p8 }
 0x283   : > { %p1585_p3 = pnand %p1584_p2, %p1578_p10 }
 0x285   : > { %1588 = shalt.err (!%p1585_p3)
}
 0x286   : > { %s1640_s13 = smov 128   ;;  %s1641_s9 = smov 8  }
 0x287   : > { %1413 = dma.vmem_to_hbm [thread:$0]  (%p1956_p0), %s1888_s28, 256, %s1893_s11, %s872_s17, %s1640_s13, %s1640_s13, %s1641_s9  }
 0x288 PF: > { %s900_s30 = sand.u32 1, %s1619_s18   ;;  %p1957_p7 = scmp.ne.s32.totalorder %s1947_s25, 0 }
 0x289   : > { %p1958_p9 = scmp.ge.s32.totalorder %s1631_s21, 2  ;;  %s901_s7 = scalar_lea.sflag [#allocation6], %s900_s30 }
 0x28b   : > { %p1427_p12 = pnand %p1958_p9, %p1957_p7 }
 0x28d   : > { %1614 = dma.done.wait (!%p1427_p12), %s901_s7, 256  }
 0x28e   : > { %1616 = vsyncadd (!%p1427_p12), %s901_s7, 4294967040  ;;  %p19_p1 = scmp.ge.s32.totalorder %s1788_s29, 4   ;;  %s1959_s18 = smov %s1623_s19 }
 0x28f   : > { %s1960_s19 = smov %s1627_s20  ;;  %s1961_s20 = smov %s1804_s27 }
 0x290   : > { %s1962_s21 = smov %s1788_s29  ;;  %21 = sbr.rel (!%p19_p1) target bundleno = 6 (0x6), region = 97 }
 0x297   :  { %906 = vsyncpa [#allocation5], 1 }
 0x298   :  { %908 = vsyncpa [#allocation5 + $0x1], 1 }
 0x299   :  { %909 = vsyncpa [#allocation8], 1 }
 0x29a   :  { %910 = vsyncpa [#allocation6], 1 }
 0x29b   :  { %912 = vsyncpa [#allocation6 + $0x1], 1 }

</bundles_post_ra>
